<compile_context>
chip_gen: v5e
topology: v5e:2x2
jax: 0.10.0
libtpu: 0.0.40
codegen_flags: <defaults>
</compile_context>

<pallas_src>
import jax
import jax.numpy as jnp
from jax.experimental import pallas as pl
from jax.experimental.pallas import tpu as pltpu

LOG_STD_MAX = 2.0
LOG_STD_MIN = -20.0


def _round_up(x, m):
    return ((x + m - 1) // m) * m


def _vmem_capacity_bytes():
    try:
        return int(pltpu.get_tpu_info().vmem_capacity_bytes)
    except Exception:
        return 64 << 20  # conservative default (v7x per-TC VMEM)


def _pick_batch_tile(b_p8, vmem_cap_bytes):
    """Batch tile (multiple of 8), generation-aware.

    v5e/v6e (128 MiB VMEM): allow up to 512-row tiles (closer to HBM roofline,
    amortizes ~0.35us per grid step).  v7x (64 MiB): cap at 256 and prefer
    >=2 grid steps so the 'parallel' axis shards across both TensorCores.
    Candidates chosen to minimize round-up waste for awkward batch sizes.
    """
    small_vmem = vmem_cap_bytes <= (64 << 20)
    max_tb = 256 if small_vmem else 512
    if b_p8 <= max_tb:
        if small_vmem and b_p8 >= 128 and b_p8 % 16 == 0:
            return b_p8 // 2  # 2 grid steps -> both v7x TensorCores busy
        return b_p8
    best_tb, best_waste = 128, None
    for tb in (128, 256, 384, 512):
        if tb > max_tb:
            continue
        waste = _round_up(b_p8, tb) - b_p8
        if (best_waste is None or waste < best_waste
                or (waste == best_waste and tb > best_tb)):
            best_tb, best_waste = tb, waste
    return best_tb


def _vmem_limit_bytes(S, H_p, A_p, TB, vmem_cap, single_buffer_weights):
    wbuf = 1 if single_buffer_weights else 2
    weight_bytes = wbuf * (2 * (S * H_p + H_p * H_p + 2 * H_p * A_p)   # bf16 weights
                           + 4 * (H_p + 2 * A_p))                      # f32 biases
    io_bytes = 2 * 4 * (TB * S + TB * 2 * A_p)                         # double-buffered I/O tiles
    live_bytes = 4 * TB * (2 * H_p + 2 * A_p)                          # h1/h2/heads f32 live
    need = weight_bytes + io_bytes + live_bytes
    return min(max(int(1.25 * need) + (2 << 20), 32 << 20), vmem_cap)


def policy_kernel(x_ref, w1_ref, b1_ref, w2_ref, b2_ref, wh_ref, bh_ref, out_ref):
    # fc1 + relu  (bf16 MXU operands, f32 accumulation, f32 elementwise)
    x = x_ref[...].astype(jnp.bfloat16)
    h1 = jnp.dot(x, w1_ref[...], preferred_element_type=jnp.float32) + b1_ref[...]
    h1 = jnp.maximum(h1, 0.0)

    # fc2 + relu
    h2 = jnp.dot(h1.astype(jnp.bfloat16), w2_ref[...],
                 preferred_element_type=jnp.float32) + b2_ref[...]
    h2 = jnp.maximum(h2, 0.0)

    # fused heads: lanes [0, A_pad) = mu, lanes [A_pad, 2*A_pad) = log_std
    heads = jnp.dot(h2.astype(jnp.bfloat16), wh_ref[...],
                    preferred_element_type=jnp.float32) + bh_ref[...]
    a_pad = heads.shape[1] // 2  # static, multiple of 128

    # Single lane-dense full-width store: mu lanes pass through, std lanes get
    # clip -> exp.  The redundant clip/exp on mu lanes rides the idle EUP slot;
    # clipping before exp prevents any overflow.
    col = jax.lax.broadcasted_iota(jnp.int32, heads.shape, 1)
    std_all = jnp.exp(jnp.clip(heads, LOG_STD_MIN, LOG_STD_MAX))
    out_ref[...] = jnp.where(col >= a_pad, std_all, heads)


def _policy_pallas_call(S, H_p, A_p, B_p, TB, vmem_limit, single_buffer_weights):
    vmem = pltpu.MemorySpace.VMEM
    grid = (B_p // TB,)

    w_kwargs = {"memory_space": vmem}
    if single_buffer_weights:
        # Weights have a constant block index; 1-deep buffering halves their
        # VMEM residency (important on v7x's 64 MiB VMEM).
        w_kwargs["pipeline_mode"] = pl.Buffered(1)

    def const(shape):
        return pl.BlockSpec(shape, lambda i: (0, 0), **w_kwargs)

    flops = 2 * B_p * (S * H_p + H_p * H_p + 2 * H_p * A_p)
    bytes_accessed = (4 * B_p * S                                    # state (f32)
                      + 2 * (S * H_p + H_p * H_p + 2 * H_p * A_p)    # bf16 weights
                      + 4 * (H_p + 2 * A_p)                          # f32 biases
                      + 4 * B_p * 2 * A_p)                           # output (f32)

    # TODO(synk): for H_p >= ~4096 on v7x, add a K-tiling grid axis over
    # w2/wh ("arbitrary", reduction axis last) with a f32 VMEM accumulator
    # so single-buffered bf16 weights still fit the 64 MiB VMEM.
    return pl.pallas_call(
        policy_kernel,
        out_shape=jax.ShapeDtypeStruct((B_p, 2 * A_p), jnp.float32),
        grid=grid,
        in_specs=[
            pl.BlockSpec((TB, S), lambda i: (i, 0), memory_space=vmem),  # state
            const((S, H_p)),        # w1 (bf16)
            const((1, H_p)),        # b1 (f32)
            const((H_p, H_p)),      # w2 (bf16)
            const((1, H_p)),        # b2 (f32)
            const((H_p, 2 * A_p)),  # fused head weight (bf16)
            const((1, 2 * A_p)),    # fused head bias   (f32)
        ],
        out_specs=pl.BlockSpec((TB, 2 * A_p), lambda i: (i, 0), memory_space=vmem),
        compiler_params=pltpu.CompilerParams(
            dimension_semantics=("parallel",),
            vmem_limit_bytes=vmem_limit),
        cost_estimate=pl.CostEstimate(
            flops=flops, transcendentals=B_p * 2 * A_p,
            bytes_accessed=bytes_accessed),
    )


def prepare_params(params):
    """One-time weight padding + bf16 cast + head fusion (hoisted out of the
    forward hot path — cache the result and reuse it every call)."""
    S, H = params["w1"].shape
    A = params["wmu"].shape[1]
    H_p = _round_up(H, 128)
    A_p = _round_up(A, 128)
    f32, bf16 = jnp.float32, jnp.bfloat16

    w1 = jnp.zeros((S, H_p), f32).at[:, :H].set(params["w1"]).astype(bf16)
    b1 = jnp.zeros((1, H_p), f32).at[:, :H].set(params["b1"])
    w2 = jnp.zeros((H_p, H_p), f32).at[:H, :H].set(params["w2"]).astype(bf16)
    b2 = jnp.zeros((1, H_p), f32).at[:, :H].set(params["b2"])
    # fused head weight/bias: [mu | log_std] along lanes
    wh = (jnp.zeros((H_p, 2 * A_p), f32)
          .at[:H, :A].set(params["wmu"])
          .at[:H, A_p:A_p + A].set(params["wls"])).astype(bf16)
    bh = (jnp.zeros((1, 2 * A_p), f32)
          .at[:, :A].set(params["bmu"])
          .at[:, A_p:A_p + A].set(params["bls"]))

    return {"w1": w1, "b1": b1, "w2": w2, "b2": b2, "wh": wh, "bh": bh,
            "state_dim": S, "hidden_pad": H_p,
            "num_action": A, "action_pad": A_p}


def stochastic_policy_forward(state, prepared):
    """state: (B, state_dim) f32.  prepared: output of prepare_params()."""
    B, S = state.shape
    assert S == prepared["state_dim"]
    H_p = prepared["hidden_pad"]
    A = prepared["num_action"]
    A_p = prepared["action_pad"]

    vmem_cap = _vmem_capacity_bytes()
    B_p8 = _round_up(B, 8)
    TB = _pick_batch_tile(B_p8, vmem_cap)
    B_p = _round_up(B_p8, TB)

    # Only the batch dim of the (cheap) activation is padded; weights were
    # padded once in prepare_params.  No copy at all when B is already aligned.
    x = state if B_p == B else jnp.zeros((B_p, S), jnp.float32).at[:B].set(state)
    args = (x, prepared["w1"], prepared["b1"], prepared["w2"], prepared["b2"],
            prepared["wh"], prepared["bh"])

    try:
        vml = _vmem_limit_bytes(S, H_p, A_p, TB, vmem_cap, True)
        out = _policy_pallas_call(S, H_p, A_p, B_p, TB, vml, True)(*args)
    except Exception:
        # Fallback if pipeline_mode=pl.Buffered(1) is rejected by this
        # JAX/Mosaic version: default double-buffered weights (2x weight VMEM).
        vml = _vmem_limit_bytes(S, H_p, A_p, TB, vmem_cap, False)
        out = _policy_pallas_call(S, H_p, A_p, B_p, TB, vml, False)(*args)

    mu = out[:B, :A]
    std = out[:B, A_p:A_p + A]
    return mu, std


def init_params(key, state_dim, num_action, hidden_dim):
    """Deterministic kaiming-uniform-ish init; biases zero (per weight_init_)."""
    ks = jax.random.split(key, 4)

    def kaiming_uniform(k, fan_in, fan_out):
        bound = jnp.sqrt(6.0 / fan_in)
        # stored as (in, out) — pre-transposed relative to torch.nn.Linear
        return jax.random.uniform(k, (fan_in, fan_out), jnp.float32, -bound, bound)

    return {
        "w1": kaiming_uniform(ks[0], state_dim, hidden_dim),
        "b1": jnp.zeros((1, hidden_dim), jnp.float32),
        "w2": kaiming_uniform(ks[1], hidden_dim, hidden_dim),
        "b2": jnp.zeros((1, hidden_dim), jnp.float32),
        "wmu": kaiming_uniform(ks[2], hidden_dim, num_action),
        "bmu": jnp.zeros((1, num_action), jnp.float32),
        "wls": kaiming_uniform(ks[3], hidden_dim, num_action),
        "bls": jnp.zeros((1, num_action), jnp.float32),
    }


def reference_forward(state, p):
    h1 = jnp.maximum(state @ p["w1"] + p["b1"], 0.0)
    h2 = jnp.maximum(h1 @ p["w2"] + p["b2"], 0.0)
    mu = h2 @ p["wmu"] + p["bmu"]
    log_std = jnp.clip(h2 @ p["wls"] + p["bls"], LOG_STD_MIN, LOG_STD_MAX)
    return mu, jnp.exp(log_std)


def reference_forward_bf16(state, p):
    """Reference using the same bf16 operand quantization as the kernel."""
    bf16 = jnp.bfloat16

    def mm(a, w):
        return jnp.dot(a.astype(bf16), w.astype(bf16),
                       preferred_element_type=jnp.float32)

    h1 = jnp.maximum(mm(state, p["w1"]) + p["b1"], 0.0)
    h2 = jnp.maximum(mm(h1, p["w2"]) + p["b2"], 0.0)
    mu = mm(h2, p["wmu"]) + p["bmu"]
    log_std = jnp.clip(mm(h2, p["wls"]) + p["bls"], LOG_STD_MIN, LOG_STD_MAX)
    return mu, jnp.exp(log_std)


if __name__ == "__main__":
    key = jax.random.PRNGKey(0)
    k_state, k_params = jax.random.split(key)

    batch, state_dim, num_action, hidden_dim = 8, 16, 8, 32

    state = jax.random.normal(k_state, (batch, state_dim), jnp.float32)
    params = init_params(k_params, state_dim, num_action, hidden_dim)
    prepared = prepare_params(params)   # one-time prep, cached outside hot path

    mu, std = stochastic_policy_forward(state, prepared)
    mu, std = jax.block_until_ready((mu, std))

    mu_ref, std_ref = reference_forward(state, params)
    mu_bq, std_bq = reference_forward_bf16(state, params)

    assert mu.shape == (batch, num_action) and std.shape == (batch, num_action)
    # loose check vs the f32 reference (bf16 weight quantization)
    assert jnp.allclose(mu, mu_ref, atol=3e-2, rtol=3e-2)
    assert jnp.allclose(std, std_ref, atol=3e-2, rtol=3e-2)
    # tight check vs a reference with the same bf16 operand quantization
    assert jnp.allclose(mu, mu_bq, atol=1e-4, rtol=1e-4)
    assert jnp.allclose(std, std_bq, atol=1e-4, rtol=1e-4)
    assert bool(jnp.all(std > 0.0))

    # TODO(synk): `sample()` (rsample + tanh squash + log_prob) is host-side
    # distribution logic; only the forward() hot path is implemented in Pallas.
    print("KERNEL_OK")
</pallas_src>

<mosaic_0001>
module attributes {stable_mosaic.version = 11 : i64} {
  func.func @policy_kernel(%arg0: i32, %arg1: memref<8x16xf32, #tpu.memory_space<vmem>>, %arg2: memref<16x128xbf16, #tpu.memory_space<vmem>>, %arg3: memref<1x128xf32, #tpu.memory_space<vmem>>, %arg4: memref<128x128xbf16, #tpu.memory_space<vmem>>, %arg5: memref<1x128xf32, #tpu.memory_space<vmem>>, %arg6: memref<128x256xbf16, #tpu.memory_space<vmem>>, %arg7: memref<1x256xf32, #tpu.memory_space<vmem>>, %arg8: memref<8x256xf32, #tpu.memory_space<vmem>>) attributes {dimension_semantics = [#tpu.dimension_semantics<parallel>], iteration_bounds = array<i64: 1>, scalar_prefetch = 0 : i64, scratch_operands = 0 : i64, tpu.core_type = #tpu.core_type<tc>, window_params = [{transform_indices = @transform_0, window_bounds = array<i64: 8, 16>}, {pipeline_mode = #tpu.pipeline_mode<synchronous>, transform_indices = @transform_1, window_bounds = array<i64: 16, 128>}, {pipeline_mode = #tpu.pipeline_mode<synchronous>, transform_indices = @transform_2, window_bounds = array<i64: 1, 128>}, {pipeline_mode = #tpu.pipeline_mode<synchronous>, transform_indices = @transform_3, window_bounds = array<i64: 128, 128>}, {pipeline_mode = #tpu.pipeline_mode<synchronous>, transform_indices = @transform_4, window_bounds = array<i64: 1, 128>}, {pipeline_mode = #tpu.pipeline_mode<synchronous>, transform_indices = @transform_5, window_bounds = array<i64: 128, 256>}, {pipeline_mode = #tpu.pipeline_mode<synchronous>, transform_indices = @transform_6, window_bounds = array<i64: 1, 256>}, {transform_indices = @transform_7, window_bounds = array<i64: 8, 256>}]} {
    %c0 = arith.constant 0 : index
    %c0_0 = arith.constant 0 : index
    %0 = vector.load %arg1[%c0, %c0_0] : memref<8x16xf32, #tpu.memory_space<vmem>>, vector<8x16xf32>
    %1 = arith.truncf %0 : vector<8x16xf32> to vector<8x16xbf16>
    %c0_1 = arith.constant 0 : index
    %c0_2 = arith.constant 0 : index
    %2 = vector.load %arg2[%c0_1, %c0_2] : memref<16x128xbf16, #tpu.memory_space<vmem>>, vector<16x128xbf16>
    %cst = arith.constant dense<0.000000e+00> : vector<8x128xf32>
    %3 = tpu.matmul %1, %2, %cst {dimension_numbers = #tpu.dot_dimension_numbers<[1], [0], [0], [1], [0, 0, 1, 1], [], []>} : vector<8x16xbf16>, vector<16x128xbf16>, vector<8x128xf32> -> vector<8x128xf32>
    %c0_3 = arith.constant 0 : index
    %c0_4 = arith.constant 0 : index
    %4 = vector.load %arg3[%c0_3, %c0_4] : memref<1x128xf32, #tpu.memory_space<vmem>>, vector<1x128xf32>
    %5 = vector.broadcast %4 : vector<1x128xf32> to vector<8x128xf32>
    %6 = arith.addf %3, %5 : vector<8x128xf32>
    %cst_5 = arith.constant 0.000000e+00 : f32
    %7 = vector.broadcast %cst_5 : f32 to vector<8x128xf32>
    %8 = arith.maximumf %6, %7 : vector<8x128xf32>
    %9 = arith.truncf %8 : vector<8x128xf32> to vector<8x128xbf16>
    %c0_6 = arith.constant 0 : index
    %c0_7 = arith.constant 0 : index
    %10 = vector.load %arg4[%c0_6, %c0_7] : memref<128x128xbf16, #tpu.memory_space<vmem>>, vector<128x128xbf16>
    %cst_8 = arith.constant dense<0.000000e+00> : vector<8x128xf32>
    %11 = tpu.matmul %9, %10, %cst_8 {dimension_numbers = #tpu.dot_dimension_numbers<[1], [0], [0], [1], [0, 0, 1, 1], [], []>} : vector<8x128xbf16>, vector<128x128xbf16>, vector<8x128xf32> -> vector<8x128xf32>
    %c0_9 = arith.constant 0 : index
    %c0_10 = arith.constant 0 : index
    %12 = vector.load %arg5[%c0_9, %c0_10] : memref<1x128xf32, #tpu.memory_space<vmem>>, vector<1x128xf32>
    %13 = vector.broadcast %12 : vector<1x128xf32> to vector<8x128xf32>
    %14 = arith.addf %11, %13 : vector<8x128xf32>
    %cst_11 = arith.constant 0.000000e+00 : f32
    %15 = vector.broadcast %cst_11 : f32 to vector<8x128xf32>
    %16 = arith.maximumf %14, %15 : vector<8x128xf32>
    %17 = arith.truncf %16 : vector<8x128xf32> to vector<8x128xbf16>
    %c0_12 = arith.constant 0 : index
    %c0_13 = arith.constant 0 : index
    %18 = vector.load %arg6[%c0_12, %c0_13] : memref<128x256xbf16, #tpu.memory_space<vmem>>, vector<128x256xbf16>
    %cst_14 = arith.constant dense<0.000000e+00> : vector<8x256xf32>
    %19 = tpu.matmul %17, %18, %cst_14 {dimension_numbers = #tpu.dot_dimension_numbers<[1], [0], [0], [1], [0, 0, 1, 1], [], []>} : vector<8x128xbf16>, vector<128x256xbf16>, vector<8x256xf32> -> vector<8x256xf32>
    %c0_15 = arith.constant 0 : index
    %c0_16 = arith.constant 0 : index
    %20 = vector.load %arg7[%c0_15, %c0_16] : memref<1x256xf32, #tpu.memory_space<vmem>>, vector<1x256xf32>
    %21 = vector.broadcast %20 : vector<1x256xf32> to vector<8x256xf32>
    %22 = arith.addf %19, %21 : vector<8x256xf32>
    %23 = tpu.iota {dimensions = array<i32: 1>} : vector<8x256xi32>
    %cst_17 = arith.constant -2.000000e+01 : f32
    %cst_18 = arith.constant 2.000000e+00 : f32
    %24 = vector.broadcast %cst_17 : f32 to vector<8x256xf32>
    %25 = arith.maximumf %24, %22 : vector<8x256xf32>
    %26 = vector.broadcast %cst_18 : f32 to vector<8x256xf32>
    %27 = arith.minimumf %26, %25 : vector<8x256xf32>
    %28 = math.exp %27 : vector<8x256xf32>
    %c128_i32 = arith.constant 128 : i32
    %29 = vector.broadcast %c128_i32 : i32 to vector<8x256xi32>
    %30 = arith.cmpi sge, %23, %29 : vector<8x256xi32>
    %31 = arith.select %30, %28, %22 : vector<8x256xi1>, vector<8x256xf32>
    %c0_19 = arith.constant 0 : index
    %c0_20 = arith.constant 0 : index
    %32 = vector.load %arg8[%c0_19, %c0_20] : memref<8x256xf32, #tpu.memory_space<vmem>>, vector<8x256xf32>
    tpu.vector_store %arg8[%c0_19, %c0_20], %31 {strides = array<i32>} : memref<8x256xf32, #tpu.memory_space<vmem>>, vector<8x256xf32>,
    return
  }
  func.func @transform_0(%arg0: i32) -> (i32, i32) {
    %c0_i32 = arith.constant 0 : i32
    %c0_i32_0 = arith.constant 0 : i32
    return %arg0, %c0_i32 : i32, i32
  }
  func.func @transform_1(%arg0: i32) -> (i32, i32) {
    %c0_i32 = arith.constant 0 : i32
    %c0_i32_0 = arith.constant 0 : i32
    %c0_i32_1 = arith.constant 0 : i32
    return %c0_i32, %c0_i32_0 : i32, i32
  }
  func.func @transform_2(%arg0: i32) -> (i32, i32) {
    %c0_i32 = arith.constant 0 : i32
    %c0_i32_0 = arith.constant 0 : i32
    %c0_i32_1 = arith.constant 0 : i32
    return %c0_i32, %c0_i32_0 : i32, i32
  }
  func.func @transform_3(%arg0: i32) -> (i32, i32) {
    %c0_i32 = arith.constant 0 : i32
    %c0_i32_0 = arith.constant 0 : i32
    %c0_i32_1 = arith.constant 0 : i32
    return %c0_i32, %c0_i32_0 : i32, i32
  }
  func.func @transform_4(%arg0: i32) -> (i32, i32) {
    %c0_i32 = arith.constant 0 : i32
    %c0_i32_0 = arith.constant 0 : i32
    %c0_i32_1 = arith.constant 0 : i32
    return %c0_i32, %c0_i32_0 : i32, i32
  }
  func.func @transform_5(%arg0: i32) -> (i32, i32) {
    %c0_i32 = arith.constant 0 : i32
    %c0_i32_0 = arith.constant 0 : i32
    %c0_i32_1 = arith.constant 0 : i32
    return %c0_i32, %c0_i32_0 : i32, i32
  }
  func.func @transform_6(%arg0: i32) -> (i32, i32) {
    %c0_i32 = arith.constant 0 : i32
    %c0_i32_0 = arith.constant 0 : i32
    %c0_i32_1 = arith.constant 0 : i32
    return %c0_i32, %c0_i32_0 : i32, i32
  }
  func.func @transform_7(%arg0: i32) -> (i32, i32) {
    %c0_i32 = arith.constant 0 : i32
    %c0_i32_0 = arith.constant 0 : i32
    return %arg0, %c0_i32 : i32, i32
  }
}

module attributes {stable_mosaic.version = 11 : i64} {
  func.func @policy_kernel(%arg0: i32, %arg1: memref<8x16xf32, #tpu.memory_space<vmem>>, %arg2: memref<16x128xbf16, #tpu.memory_space<vmem>>, %arg3: memref<1x128xf32, #tpu.memory_space<vmem>>, %arg4: memref<128x128xbf16, #tpu.memory_space<vmem>>, %arg5: memref<1x128xf32, #tpu.memory_space<vmem>>, %arg6: memref<128x256xbf16, #tpu.memory_space<vmem>>, %arg7: memref<1x256xf32, #tpu.memory_space<vmem>>, %arg8: memref<8x256xf32, #tpu.memory_space<vmem>>) attributes {dimension_semantics = [#tpu.dimension_semantics<parallel>], iteration_bounds = array<i64: 1>, scalar_prefetch = 0 : i64, scratch_operands = 0 : i64, tpu.core_type = #tpu.core_type<tc>, window_params = [{transform_indices = @transform_0, window_bounds = array<i64: 8, 16>}, {pipeline_mode = #tpu.pipeline_mode<synchronous>, transform_indices = @transform_1, window_bounds = array<i64: 16, 128>}, {pipeline_mode = #tpu.pipeline_mode<synchronous>, transform_indices = @transform_2, window_bounds = array<i64: 1, 128>}, {pipeline_mode = #tpu.pipeline_mode<synchronous>, transform_indices = @transform_3, window_bounds = array<i64: 128, 128>}, {pipeline_mode = #tpu.pipeline_mode<synchronous>, transform_indices = @transform_4, window_bounds = array<i64: 1, 128>}, {pipeline_mode = #tpu.pipeline_mode<synchronous>, transform_indices = @transform_5, window_bounds = array<i64: 128, 256>}, {pipeline_mode = #tpu.pipeline_mode<synchronous>, transform_indices = @transform_6, window_bounds = array<i64: 1, 256>}, {transform_indices = @transform_7, window_bounds = array<i64: 8, 256>}]} {
    %c0 = arith.constant 0 : index
    %c0_0 = arith.constant 0 : index
    %0 = vector.load %arg1[%c0, %c0_0] : memref<8x16xf32, #tpu.memory_space<vmem>>, vector<8x16xf32>
    %1 = arith.truncf %0 : vector<8x16xf32> to vector<8x16xbf16>
    %c0_1 = arith.constant 0 : index
    %c0_2 = arith.constant 0 : index
    %2 = vector.load %arg2[%c0_1, %c0_2] : memref<16x128xbf16, #tpu.memory_space<vmem>>, vector<16x128xbf16>
    %cst = arith.constant dense<0.000000e+00> : vector<8x128xf32>
    %3 = tpu.matmul %1, %2, %cst {dimension_numbers = #tpu.dot_dimension_numbers<[1], [0], [0], [1], [0, 0, 1, 1], [], []>} : vector<8x16xbf16>, vector<16x128xbf16>, vector<8x128xf32> -> vector<8x128xf32>
    %c0_3 = arith.constant 0 : index
    %c0_4 = arith.constant 0 : index
    %4 = vector.load %arg3[%c0_3, %c0_4] : memref<1x128xf32, #tpu.memory_space<vmem>>, vector<1x128xf32>
    %5 = vector.broadcast %4 : vector<1x128xf32> to vector<8x128xf32>
    %6 = arith.addf %3, %5 : vector<8x128xf32>
    %cst_5 = arith.constant 0.000000e+00 : f32
    %7 = vector.broadcast %cst_5 : f32 to vector<8x128xf32>
    %8 = arith.maximumf %6, %7 : vector<8x128xf32>
    %9 = arith.truncf %8 : vector<8x128xf32> to vector<8x128xbf16>
    %c0_6 = arith.constant 0 : index
    %c0_7 = arith.constant 0 : index
    %10 = vector.load %arg4[%c0_6, %c0_7] : memref<128x128xbf16, #tpu.memory_space<vmem>>, vector<128x128xbf16>
    %cst_8 = arith.constant dense<0.000000e+00> : vector<8x128xf32>
    %11 = tpu.matmul %9, %10, %cst_8 {dimension_numbers = #tpu.dot_dimension_numbers<[1], [0], [0], [1], [0, 0, 1, 1], [], []>} : vector<8x128xbf16>, vector<128x128xbf16>, vector<8x128xf32> -> vector<8x128xf32>
    %c0_9 = arith.constant 0 : index
    %c0_10 = arith.constant 0 : index
    %12 = vector.load %arg5[%c0_9, %c0_10] : memref<1x128xf32, #tpu.memory_space<vmem>>, vector<1x128xf32>
    %13 = vector.broadcast %12 : vector<1x128xf32> to vector<8x128xf32>
    %14 = arith.addf %11, %13 : vector<8x128xf32>
    %cst_11 = arith.constant 0.000000e+00 : f32
    %15 = vector.broadcast %cst_11 : f32 to vector<8x128xf32>
    %16 = arith.maximumf %14, %15 : vector<8x128xf32>
    %17 = arith.truncf %16 : vector<8x128xf32> to vector<8x128xbf16>
    %c0_12 = arith.constant 0 : index
    %c0_13 = arith.constant 0 : index
    %18 = vector.load %arg6[%c0_12, %c0_13] : memref<128x256xbf16, #tpu.memory_space<vmem>>, vector<128x256xbf16>
    %cst_14 = arith.constant dense<0.000000e+00> : vector<8x256xf32>
    %19 = tpu.matmul %17, %18, %cst_14 {dimension_numbers = #tpu.dot_dimension_numbers<[1], [0], [0], [1], [0, 0, 1, 1], [], []>} : vector<8x128xbf16>, vector<128x256xbf16>, vector<8x256xf32> -> vector<8x256xf32>
    %c0_15 = arith.constant 0 : index
    %c0_16 = arith.constant 0 : index
    %20 = vector.load %arg7[%c0_15, %c0_16] : memref<1x256xf32, #tpu.memory_space<vmem>>, vector<1x256xf32>
    %21 = vector.broadcast %20 : vector<1x256xf32> to vector<8x256xf32>
    %22 = arith.addf %19, %21 : vector<8x256xf32>
    %23 = tpu.iota {dimensions = array<i32: 1>} : vector<8x256xi32>
    %cst_17 = arith.constant -2.000000e+01 : f32
    %cst_18 = arith.constant 2.000000e+00 : f32
    %24 = vector.broadcast %cst_17 : f32 to vector<8x256xf32>
    %25 = arith.maximumf %24, %22 : vector<8x256xf32>
    %26 = vector.broadcast %cst_18 : f32 to vector<8x256xf32>
    %27 = arith.minimumf %26, %25 : vector<8x256xf32>
    %28 = math.exp %27 : vector<8x256xf32>
    %c128_i32 = arith.constant 128 : i32
    %29 = vector.broadcast %c128_i32 : i32 to vector<8x256xi32>
    %30 = arith.cmpi sge, %23, %29 : vector<8x256xi32>
    %31 = arith.select %30, %28, %22 : vector<8x256xi1>, vector<8x256xf32>
    %c0_19 = arith.constant 0 : index
    %c0_20 = arith.constant 0 : index
    %32 = vector.load %arg8[%c0_19, %c0_20] : memref<8x256xf32, #tpu.memory_space<vmem>>, vector<8x256xf32>
    tpu.vector_store %arg8[%c0_19, %c0_20], %31 {strides = array<i32>} : memref<8x256xf32, #tpu.memory_space<vmem>>, vector<8x256xf32>,
    return
  }
  func.func @transform_0(%arg0: i32) -> (i32, i32) {
    %c0_i32 = arith.constant 0 : i32
    %c0_i32_0 = arith.constant 0 : i32
    return %arg0, %c0_i32 : i32, i32
  }
  func.func @transform_1(%arg0: i32) -> (i32, i32) {
    %c0_i32 = arith.constant 0 : i32
    %c0_i32_0 = arith.constant 0 : i32
    %c0_i32_1 = arith.constant 0 : i32
    return %c0_i32, %c0_i32_0 : i32, i32
  }
  func.func @transform_2(%arg0: i32) -> (i32, i32) {
    %c0_i32 = arith.constant 0 : i32
    %c0_i32_0 = arith.constant 0 : i32
    %c0_i32_1 = arith.constant 0 : i32
    return %c0_i32, %c0_i32_0 : i32, i32
  }
  func.func @transform_3(%arg0: i32) -> (i32, i32) {
    %c0_i32 = arith.constant 0 : i32
    %c0_i32_0 = arith.constant 0 : i32
    %c0_i32_1 = arith.constant 0 : i32
    return %c0_i32, %c0_i32_0 : i32, i32
  }
  func.func @transform_4(%arg0: i32) -> (i32, i32) {
    %c0_i32 = arith.constant 0 : i32
    %c0_i32_0 = arith.constant 0 : i32
    %c0_i32_1 = arith.constant 0 : i32
    return %c0_i32, %c0_i32_0 : i32, i32
  }
  func.func @transform_5(%arg0: i32) -> (i32, i32) {
    %c0_i32 = arith.constant 0 : i32
    %c0_i32_0 = arith.constant 0 : i32
    %c0_i32_1 = arith.constant 0 : i32
    return %c0_i32, %c0_i32_0 : i32, i32
  }
  func.func @transform_6(%arg0: i32) -> (i32, i32) {
    %c0_i32 = arith.constant 0 : i32
    %c0_i32_0 = arith.constant 0 : i32
    %c0_i32_1 = arith.constant 0 : i32
    return %c0_i32, %c0_i32_0 : i32, i32
  }
  func.func @transform_7(%arg0: i32) -> (i32, i32) {
    %c0_i32 = arith.constant 0 : i32
    %c0_i32_0 = arith.constant 0 : i32
    return %arg0, %c0_i32 : i32, i32
  }
}

</mosaic_0001>

<bundles_post_ra>
// kernel: tpu_custom_call.1
= control target key start
LH: loop header
LB: loop body
LE: loop exit
PB: predicated region body
PF: predicated region fallthrough
CT: control target
= control target key end

     0   :  { %12 = vsyncpa [#allocation3], 0  ;;  %s748_s0 = inlined_call_operand.hbm [shape: f32[8,16], index: 0, kind: input, shape index: {}]   ;;  %s749_s1 = inlined_call_operand.hbm [shape: bf16[16,128], index: 1, kind: input, shape index: {}]   ;;  %s750_s2 = inlined_call_operand.vmem [shape: f32[1,128], index: 2, kind: input, shape index: {}]   ;;  %s751_s3 = inlined_call_operand.hbm [shape: bf16[128,128], index: 3, kind: input, shape index: {}]   ;;  %s752_s4 = inlined_call_operand.hbm [shape: f32[1,128], index: 4, kind: input, shape index: {}]   ;;  %s753_s5 = inlined_call_operand.hbm [shape: bf16[128,256], index: 5, kind: input, shape index: {}]   ;;  %s754_s6 = inlined_call_operand.vmem [shape: f32[1,256], index: 6, kind: input, shape index: {}]   ;;  %s755_s7 = inlined_call_operand.hbm [shape: f32[8,256], index: 7, kind: output, shape index: {}]  }
   0x1   :  { %13 = vsyncpa [#allocation6], 0 }
   0x2   :  { %14 = vsyncpa [#allocation9], 0  ;;  %s31_s26 = sshll.u32 %s749_s1, 4  ;;  %s32_s26 = int_to_ptr.hbm [resolvable:$true] %s31_s26 }
   0x3   :  { %15 = vsyncpa [#allocation4], 0  ;;  %s674_s27 = smov [#allocation5]   ;;  %s60_s8 = sshll.u32 %s752_s4, 4  ;;  %s61_s8 = int_to_ptr.hbm [resolvable:$true] %s60_s8 }
   0x4   :  { %s33_s28 = sshll.u32 %s674_s27, 4  ;;  %s675_s9 = smov 64   ;;  %s34_s28 = int_to_ptr.vmem [resolvable:$true] %s33_s28 }
   0x5   :  { %s676_s10 = smov 4   ;;  %s677_s11 = smov [#allocation8]  }
   0x6   :  { %39 = dma.hbm_to_vmem [thread:$0]  %s32_s26, 128, %s34_s28, [#allocation6], %s675_s9, %s675_s9, %s676_s10  }
   0x7   :  { %s62_s12 = sshll.u32 %s677_s11, 4  ;;  %s21_s15 = sshll.u32 %s748_s0, 4  ;;  %s63_s12 = int_to_ptr.vmem [resolvable:$true] %s62_s12  ;;  %s22_s15 = int_to_ptr.hbm [resolvable:$true] %s21_s15 }
   0x8   :  { %65 = dma.hbm_to_vmem [thread:$0]  %s61_s8, 16, %s63_s12, [#allocation9]  }
   0x9   :  { %s46_s17 = sshll.u32 %s751_s3, 4  ;;  %s678_s18 = smov [#allocation2]   ;;  %s47_s17 = int_to_ptr.hbm [resolvable:$true] %s46_s17 }
   0xa   :  { %s23_s19 = sshll.u32 %s678_s18, 4  ;;  %s679_s4 = smov [#allocation7]   ;;  %s24_s19 = int_to_ptr.vmem [resolvable:$true] %s23_s19 }
   0xb   :  { %26 = dma.hbm_to_vmem [thread:$0]  %s22_s15, 128, %s24_s19, [#allocation3]  }
   0xc   :  { %s48_s20 = sshll.u32 %s679_s4, 4  ;;  %s70_s23 = sshll.u32 %s753_s5, 4  ;;  %s49_s20 = int_to_ptr.vmem [resolvable:$true] %s48_s20  ;;  %s71_s23 = int_to_ptr.hbm [resolvable:$true] %s70_s23 }
   0xd   :  { %54 = dma.hbm_to_vmem [thread:$0]  %s47_s17, 1024, %s49_s20, [#allocation6], %s675_s9, %s675_s9, %s676_s10  }
   0xe   :  { %s680_s0 = smov [#allocation10]   ;;  %s681_s25 = smov 128  }
   0xf   :  { %s72_s24 = sshll.u32 %s680_s0, 4  ;;  %s682_s26 = smov 8   ;;  %s73_s24 = int_to_ptr.vmem [resolvable:$true] %s72_s24 }
  0x10   :  { %78 = dma.hbm_to_vmem [thread:$0]  %s71_s23, 2048, %s73_s24, [#allocation9], %s681_s25, %s681_s25, %s682_s26  }
  0x11   :  { %666 = dma.done.wait [#allocation3], 128  }
  0x12   :  { %667 = vsyncadd [#allocation3], 4294967168 }
  0x13   :  { %668 = dma.done.wait [#allocation6], 1152  }
  0x14   :  { %669 = vsyncadd [#allocation6], 4294966144 }
  0x15   :  { %670 = dma.done.wait [#allocation9], 2064  }
  0x16   :  { %671 = vsyncadd [#allocation9], 4294965232  ;;  %v483_v0 = vld [vmem:[#allocation5] sm:$0xff]  ;;  %v102_v1 = vld [vmem:[#allocation2] sm:$0xff]  ;;  %vm116_vm0 = vcmask 130048   ;;  %s683_s28 = smov [#allocation11]  }
  0x17   :  { %v491_v2 = vld [vmem:[#allocation7 + $0x38] sm:$0xff]  ;;  %v103_v3 = vpack.c.bf16 %v102_v1, %v102_v1  ;;  %127 = vmatpush.bf16.msra.mxu0 %v483_v0  ;;  %v490_v4 = vld [vmem:[#allocation7 + $0x30] sm:$0xff]  ;;  %v489_v5 = vld [vmem:[#allocation7 + $0x28] sm:$0xff]  ;;  %s368_s29 = sshll.u32 %s683_s28, 4  ;;  %s370_s9 = sshll.u32 %s755_s7, 4  ;;  %s369_s29 = int_to_ptr.vmem [resolvable:$true] %s368_s29  ;;  %s371_s9 = int_to_ptr.hbm [resolvable:$true] %s370_s9 }
  0x18   :  { %203 = vmatpush.bf16.msra.mxu1 %v491_v2  ;;  %v488_v6 = vld [vmem:[#allocation7 + $0x20] sm:$0xff]  ;;  %v487_v7 = vld [vmem:[#allocation7 + $0x18] sm:$0xff]  ;;  %v486_v8 = vld [vmem:[#allocation7 + $0x10] sm:$0xff] }
  0x19   :  { %v485_v9 = vld [vmem:[#allocation7 + $0x8] sm:$0xff]  ;;  %v484_v10 = vld [vmem:[#allocation7] sm:$0xff]  ;;  %v477_v11 = vld [vmem:[#allocation10 + $0x70] sm:$0xf] }
  0x1a   :  { %386 = vmatmul.msk.bf16.vlgmr.msra.gmra.mxu0 %vm116_vm0, %v103_v3  ;;  %v507_v12 = vld [vmem:[#allocation10 + $0x74] sm:$0xf0]  ;;  %v506_v13 = vld [vmem:[#allocation10 + $0x74] sm:$0xf]  ;;  %v479_v15 = vld [vmem:[#allocation10 + $0x78] sm:$0xf0] }
  0x1b   :  { %v478_v14 = vor.u32 %v507_v12, %v477_v11  ;;  %v469_v16 = vld [vmem:[#allocation10 + $0x60] sm:$0xf]  ;;  %v505_v17 = vld [vmem:[#allocation10 + $0x64] sm:$0xf0]  ;;  %v482_v18 = vor.u32 %v506_v13, %v479_v15  ;;  %v504_v19 = vld [vmem:[#allocation10 + $0x64] sm:$0xf] }
  0x1c   :  { %204 = vmatpush.bf16.msra.mxu1 %v490_v4  ;;  %v471_v20 = vld [vmem:[#allocation10 + $0x68] sm:$0xf0]  ;;  %v470_v21 = vor.u32 %v505_v17, %v469_v16  ;;  %v461_v23 = vld [vmem:[#allocation10 + $0x50] sm:$0xf]  ;;  %v503_v24 = vld [vmem:[#allocation10 + $0x54] sm:$0xf0] }
  0x1d   :  { %320 = vmatpush.bf16.msra.mxu2 %v478_v14  ;;  %333 = vmatpush.bf16.msra.mxu3 %v482_v18  ;;  %v474_v22 = vor.u32 %v504_v19, %v471_v20  ;;  %v502_v25 = vld [vmem:[#allocation10 + $0x54] sm:$0xf]  ;;  %v463_v26 = vld [vmem:[#allocation10 + $0x58] sm:$0xf0]  ;;  %v462_v27 = vor.u32 %v503_v24, %v461_v23  ;;  %v453_v29 = vld [vmem:[#allocation10 + $0x40] sm:$0xf] }
  0x1e   :  { %v466_v28 = vor.u32 %v502_v25, %v463_v26  ;;  %v501_v30 = vld [vmem:[#allocation10 + $0x44] sm:$0xf0]  ;;  %v500_v31 = vld [vmem:[#allocation10 + $0x44] sm:$0xf]  ;;  %v455_v32 = vld [vmem:[#allocation10 + $0x48] sm:$0xf0] }
  0x1f   :  { %v454_v33 = vor.u32 %v501_v30, %v453_v29  ;;  %v458_v34 = vor.u32 %v500_v31, %v455_v32  ;;  %v445_v35 = vld [vmem:[#allocation10 + $0x30] sm:$0xf]  ;;  %v499_v36 = vld [vmem:[#allocation10 + $0x34] sm:$0xf0]  ;;  %v498_v37 = vld [vmem:[#allocation10 + $0x34] sm:$0xf] }
  0x20   :  { %205 = vmatpush.bf16.msra.mxu1 %v489_v5  ;;  %v447_v38 = vld [vmem:[#allocation10 + $0x38] sm:$0xf0]  ;;  %v446_v39 = vor.u32 %v499_v36, %v445_v35  ;;  %v437_v41 = vld [vmem:[#allocation10 + $0x20] sm:$0xf]  ;;  %v497_v42 = vld [vmem:[#allocation10 + $0x24] sm:$0xf0] }
  0x21   :  { %321 = vmatpush.bf16.msra.mxu2 %v470_v21  ;;  %334 = vmatpush.bf16.msra.mxu3 %v474_v22  ;;  %v450_v40 = vor.u32 %v498_v37, %v447_v38  ;;  %v496_v43 = vld [vmem:[#allocation10 + $0x24] sm:$0xf]  ;;  %v439_v44 = vld [vmem:[#allocation10 + $0x28] sm:$0xf0]  ;;  %v438_v45 = vor.u32 %v497_v42, %v437_v41  ;;  %v429_v53 = vld [vmem:[#allocation10 + $0x10] sm:$0xf] }
  0x22   :  { %v442_v46 = vor.u32 %v496_v43, %v439_v44  ;;  %v518_v47 = vld [vmem:[%s750_s2] ss:$0 sm:$0xff]  ;;  %v495_v54 = vld [vmem:[#allocation10 + $0x14] sm:$0xf0]  ;;  %v494_v55 = vld [vmem:[#allocation10 + $0x14] sm:$0xf] }
  0x23   :  { %v430_v56 = vor.u32 %v495_v54, %v429_v53  ;;  %v431_v57 = vld [vmem:[#allocation10 + $0x18] sm:$0xf0]  ;;  %v421_v59 = vld [vmem:[#allocation10] sm:$0xf]  ;;  %v493_v60 = vld [vmem:[#allocation10 + $0x4] sm:$0xf0] }
  0x24   :  { %206 = vmatpush.bf16.msra.mxu1 %v488_v6  ;;  %v434_v58 = vor.u32 %v494_v55, %v431_v57  ;;  %v492_v61 = vld [vmem:[#allocation10 + $0x4] sm:$0xf]  ;;  %v422_v62 = vor.u32 %v493_v60, %v421_v59  ;;  %v423_v63 = vld [vmem:[#allocation10 + $0x8] sm:$0xf0]  ;;  %v519_v1 = vld [vmem:[#allocation8] ss:$0 sm:$0xff] }
  0x25   :  { %322 = vmatpush.bf16.msra.mxu2 %v462_v27  ;;  %335 = vmatpush.bf16.msra.mxu3 %v466_v28  ;;  %v426_v0 = vor.u32 %v492_v61, %v423_v63 }
  0x28   :  { %207 = vmatpush.bf16.msra.mxu1 %v487_v7  ;;  %v234_v7 = vld [vmem:[%s754_s6] sm:$0x3] }
  0x29   :  { %323 = vmatpush.bf16.msra.mxu2 %v454_v33  ;;  %336 = vmatpush.bf16.msra.mxu3 %v458_v34 }
  0x2c   :  { %208 = vmatpush.bf16.msra.mxu1 %v486_v8  ;;  %v236_v8 = vperm.slane %v234_v7, 0 }
  0x2d   :  { %324 = vmatpush.bf16.msra.mxu2 %v446_v39  ;;  %337 = vmatpush.bf16.msra.mxu3 %v450_v40 }
  0x30   :  { %209 = vmatpush.bf16.msra.mxu1 %v485_v9  ;;  %v237_v9 = vperm.slane %v234_v7, 1 }
  0x31   :  { %325 = vmatpush.bf16.msra.mxu2 %v438_v45  ;;  %338 = vmatpush.bf16.msra.mxu3 %v442_v46 }
  0x34   :  { %210 = vmatpush.bf16.msra.mxu1 %v484_v10 }
  0x35   :  { %326 = vmatpush.bf16.msra.mxu2 %v430_v56  ;;  %339 = vmatpush.bf16.msra.mxu3 %v434_v58 }
  0x39   :  { %327 = vmatpush.bf16.msra.mxu2 %v422_v62  ;;  %340 = vmatpush.bf16.msra.mxu3 %v426_v0 }
  0x97   :  { %v129_v48 = vpop.f32.mrf.mxu0 }
  0x98   :  { %v130_v49 = vadd.f32 %v518_v47, %v129_v48 }
  0x9a   :  { %v133_v50 = vmax.f32 %v130_v49, 0.0 }
  0x9c   :  { %v134_v51 = vpack.c.bf16 %v133_v50, %v133_v50 }
  0x9e   :  { %211 = vmatmul.bf16.vlgmr.msra.gmra.mxu1 %v134_v51 }
  0x9f   :  { %v131_v52 = vpop.f32.mrf.mxu0 }
 0x11b   :  { %v212_v2 = vpop.f32.mrf.mxu1 }
 0x11c   :  { %v213_v3 = vadd.f32 %v519_v1, %v212_v2 }
 0x11e   :  { %v216_v4 = vmax.f32 %v213_v3, 0.0 }
 0x120   :  { %v217_v5 = vpack.c.bf16 %v216_v4, %v216_v4 }
 0x122   :  { %328 = vmatmul.bf16.vlgmr.msra.gmra.mxu2 %v217_v5  ;;  %341 = vmatmul.bf16.vlgmr.msra.gmra.mxu3 %v217_v5 }
 0x123   :  { %v214_v6 = vpop.f32.mrf.mxu1 }
 0x1a5   :  { %v329_v10 = vpop.f32.mrf.mxu2  ;;  %v342_v11 = vpop.f32.mrf.mxu3 }
 0x1a6   :  { %v330_v12 = vadd.f32 %v329_v10, %v236_v8  ;;  %v343_v13 = vadd.f32 %v342_v11, %v237_v9 }
 0x1a8   :  { %361 = vst [vmem:[#allocation11] sm:$0xff] %v330_v12  ;;  %v350_v14 = vmax.f32 %v343_v13, -20.0 }
 0x1aa   :  { %v352_v15 = vmin.f32 %v350_v14, 2.0 }
 0x1ac   :  { %v355_v16 = vmul.f32 1.442695, %v352_v15 }
 0x1ad   :  { %v331_v17 = vpop.f32.mrf.mxu2  ;;  %v344_v18 = vpop.f32.mrf.mxu3 }
 0x1ae   :  { %520 = vpow2.f32 %v355_v16 }
 0x1b4   :  { %v521_v19 = vpop.eup %520 }
 0x1b5   :  { %362 = vst [vmem:[#allocation11 + $0x8] sm:$0xff] %v521_v19 }
 0x1b6   :  { %373 = dma.vmem_to_hbm [thread:$0]  %s369_s29, 256, %s371_s9, [#allocation4]  }
 0x1b7   :  { %672 = dma.done.wait [#allocation4], 256  }
 0x1b8   :  { %673 = vsyncadd [#allocation4], 4294967040 }
 0x1b9   :  { %378 = vsyncpa [#allocation3], 1 }
 0x1ba   :  { %379 = vsyncpa [#allocation6], 1 }
 0x1bb   :  { %380 = vsyncpa [#allocation9], 1 }
 0x1bc   :  { %381 = vsyncpa [#allocation4], 1 }

// kernel: tpu_custom_call.1
= control target key start
LH: loop header
LB: loop body
LE: loop exit
PB: predicated region body
PF: predicated region fallthrough
CT: control target
= control target key end

     0   :  { %12 = vsyncpa [#allocation3], 0  ;;  %s748_s0 = inlined_call_operand.hbm [shape: f32[8,16], index: 0, kind: input, shape index: {}]   ;;  %s749_s1 = inlined_call_operand.hbm [shape: bf16[16,128], index: 1, kind: input, shape index: {}]   ;;  %s750_s2 = inlined_call_operand.vmem [shape: f32[1,128], index: 2, kind: input, shape index: {}]   ;;  %s751_s3 = inlined_call_operand.hbm [shape: bf16[128,128], index: 3, kind: input, shape index: {}]   ;;  %s752_s4 = inlined_call_operand.hbm [shape: f32[1,128], index: 4, kind: input, shape index: {}]   ;;  %s753_s5 = inlined_call_operand.hbm [shape: bf16[128,256], index: 5, kind: input, shape index: {}]   ;;  %s754_s6 = inlined_call_operand.vmem [shape: f32[1,256], index: 6, kind: input, shape index: {}]   ;;  %s755_s7 = inlined_call_operand.hbm [shape: f32[8,256], index: 7, kind: output, shape index: {}]  }
   0x1   :  { %13 = vsyncpa [#allocation6], 0 }
   0x2   :  { %14 = vsyncpa [#allocation9], 0  ;;  %s31_s26 = sshll.u32 %s749_s1, 4  ;;  %s32_s26 = int_to_ptr.hbm [resolvable:$true] %s31_s26 }
   0x3   :  { %15 = vsyncpa [#allocation4], 0  ;;  %s674_s27 = smov [#allocation5]   ;;  %s60_s8 = sshll.u32 %s752_s4, 4  ;;  %s61_s8 = int_to_ptr.hbm [resolvable:$true] %s60_s8 }
   0x4   :  { %s33_s28 = sshll.u32 %s674_s27, 4  ;;  %s675_s9 = smov 64   ;;  %s34_s28 = int_to_ptr.vmem [resolvable:$true] %s33_s28 }
   0x5   :  { %s676_s10 = smov 4   ;;  %s677_s11 = smov [#allocation8]  }
   0x6   :  { %39 = dma.hbm_to_vmem [thread:$0]  %s32_s26, 128, %s34_s28, [#allocation6], %s675_s9, %s675_s9, %s676_s10  }
   0x7   :  { %s62_s12 = sshll.u32 %s677_s11, 4  ;;  %s21_s15 = sshll.u32 %s748_s0, 4  ;;  %s63_s12 = int_to_ptr.vmem [resolvable:$true] %s62_s12  ;;  %s22_s15 = int_to_ptr.hbm [resolvable:$true] %s21_s15 }
   0x8   :  { %65 = dma.hbm_to_vmem [thread:$0]  %s61_s8, 16, %s63_s12, [#allocation9]  }
   0x9   :  { %s46_s17 = sshll.u32 %s751_s3, 4  ;;  %s678_s18 = smov [#allocation2]   ;;  %s47_s17 = int_to_ptr.hbm [resolvable:$true] %s46_s17 }
   0xa   :  { %s23_s19 = sshll.u32 %s678_s18, 4  ;;  %s679_s4 = smov [#allocation7]   ;;  %s24_s19 = int_to_ptr.vmem [resolvable:$true] %s23_s19 }
   0xb   :  { %26 = dma.hbm_to_vmem [thread:$0]  %s22_s15, 128, %s24_s19, [#allocation3]  }
   0xc   :  { %s48_s20 = sshll.u32 %s679_s4, 4  ;;  %s70_s23 = sshll.u32 %s753_s5, 4  ;;  %s49_s20 = int_to_ptr.vmem [resolvable:$true] %s48_s20  ;;  %s71_s23 = int_to_ptr.hbm [resolvable:$true] %s70_s23 }
   0xd   :  { %54 = dma.hbm_to_vmem [thread:$0]  %s47_s17, 1024, %s49_s20, [#allocation6], %s675_s9, %s675_s9, %s676_s10  }
   0xe   :  { %s680_s0 = smov [#allocation10]   ;;  %s681_s25 = smov 128  }
   0xf   :  { %s72_s24 = sshll.u32 %s680_s0, 4  ;;  %s682_s26 = smov 8   ;;  %s73_s24 = int_to_ptr.vmem [resolvable:$true] %s72_s24 }
  0x10   :  { %78 = dma.hbm_to_vmem [thread:$0]  %s71_s23, 2048, %s73_s24, [#allocation9], %s681_s25, %s681_s25, %s682_s26  }
  0x11   :  { %666 = dma.done.wait [#allocation3], 128  }
  0x12   :  { %667 = vsyncadd [#allocation3], 4294967168 }
  0x13   :  { %668 = dma.done.wait [#allocation6], 1152  }
  0x14   :  { %669 = vsyncadd [#allocation6], 4294966144 }
  0x15   :  { %670 = dma.done.wait [#allocation9], 2064  }
  0x16   :  { %671 = vsyncadd [#allocation9], 4294965232  ;;  %v483_v0 = vld [vmem:[#allocation5] sm:$0xff]  ;;  %v102_v1 = vld [vmem:[#allocation2] sm:$0xff]  ;;  %vm116_vm0 = vcmask 130048   ;;  %s683_s28 = smov [#allocation11]  }
  0x17   :  { %v491_v2 = vld [vmem:[#allocation7 + $0x38] sm:$0xff]  ;;  %v103_v3 = vpack.c.bf16 %v102_v1, %v102_v1  ;;  %127 = vmatpush.bf16.msra.mxu0 %v483_v0  ;;  %v490_v4 = vld [vmem:[#allocation7 + $0x30] sm:$0xff]  ;;  %v489_v5 = vld [vmem:[#allocation7 + $0x28] sm:$0xff]  ;;  %s368_s29 = sshll.u32 %s683_s28, 4  ;;  %s370_s9 = sshll.u32 %s755_s7, 4  ;;  %s369_s29 = int_to_ptr.vmem [resolvable:$true] %s368_s29  ;;  %s371_s9 = int_to_ptr.hbm [resolvable:$true] %s370_s9 }
  0x18   :  { %203 = vmatpush.bf16.msra.mxu1 %v491_v2  ;;  %v488_v6 = vld [vmem:[#allocation7 + $0x20] sm:$0xff]  ;;  %v487_v7 = vld [vmem:[#allocation7 + $0x18] sm:$0xff]  ;;  %v486_v8 = vld [vmem:[#allocation7 + $0x10] sm:$0xff] }
  0x19   :  { %v485_v9 = vld [vmem:[#allocation7 + $0x8] sm:$0xff]  ;;  %v484_v10 = vld [vmem:[#allocation7] sm:$0xff]  ;;  %v477_v11 = vld [vmem:[#allocation10 + $0x70] sm:$0xf] }
  0x1a   :  { %386 = vmatmul.msk.bf16.vlgmr.msra.gmra.mxu0 %vm116_vm0, %v103_v3  ;;  %v507_v12 = vld [vmem:[#allocation10 + $0x74] sm:$0xf0]  ;;  %v506_v13 = vld [vmem:[#allocation10 + $0x74] sm:$0xf]  ;;  %v479_v15 = vld [vmem:[#allocation10 + $0x78] sm:$0xf0] }
  0x1b   :  { %v478_v14 = vor.u32 %v507_v12, %v477_v11  ;;  %v469_v16 = vld [vmem:[#allocation10 + $0x60] sm:$0xf]  ;;  %v505_v17 = vld [vmem:[#allocation10 + $0x64] sm:$0xf0]  ;;  %v482_v18 = vor.u32 %v506_v13, %v479_v15  ;;  %v504_v19 = vld [vmem:[#allocation10 + $0x64] sm:$0xf] }
  0x1c   :  { %204 = vmatpush.bf16.msra.mxu1 %v490_v4  ;;  %v471_v20 = vld [vmem:[#allocation10 + $0x68] sm:$0xf0]  ;;  %v470_v21 = vor.u32 %v505_v17, %v469_v16  ;;  %v461_v23 = vld [vmem:[#allocation10 + $0x50] sm:$0xf]  ;;  %v503_v24 = vld [vmem:[#allocation10 + $0x54] sm:$0xf0] }
  0x1d   :  { %320 = vmatpush.bf16.msra.mxu2 %v478_v14  ;;  %333 = vmatpush.bf16.msra.mxu3 %v482_v18  ;;  %v474_v22 = vor.u32 %v504_v19, %v471_v20  ;;  %v502_v25 = vld [vmem:[#allocation10 + $0x54] sm:$0xf]  ;;  %v463_v26 = vld [vmem:[#allocation10 + $0x58] sm:$0xf0]  ;;  %v462_v27 = vor.u32 %v503_v24, %v461_v23  ;;  %v453_v29 = vld [vmem:[#allocation10 + $0x40] sm:$0xf] }
  0x1e   :  { %v466_v28 = vor.u32 %v502_v25, %v463_v26  ;;  %v501_v30 = vld [vmem:[#allocation10 + $0x44] sm:$0xf0]  ;;  %v500_v31 = vld [vmem:[#allocation10 + $0x44] sm:$0xf]  ;;  %v455_v32 = vld [vmem:[#allocation10 + $0x48] sm:$0xf0] }
  0x1f   :  { %v454_v33 = vor.u32 %v501_v30, %v453_v29  ;;  %v458_v34 = vor.u32 %v500_v31, %v455_v32  ;;  %v445_v35 = vld [vmem:[#allocation10 + $0x30] sm:$0xf]  ;;  %v499_v36 = vld [vmem:[#allocation10 + $0x34] sm:$0xf0]  ;;  %v498_v37 = vld [vmem:[#allocation10 + $0x34] sm:$0xf] }
  0x20   :  { %205 = vmatpush.bf16.msra.mxu1 %v489_v5  ;;  %v447_v38 = vld [vmem:[#allocation10 + $0x38] sm:$0xf0]  ;;  %v446_v39 = vor.u32 %v499_v36, %v445_v35  ;;  %v437_v41 = vld [vmem:[#allocation10 + $0x20] sm:$0xf]  ;;  %v497_v42 = vld [vmem:[#allocation10 + $0x24] sm:$0xf0] }
  0x21   :  { %321 = vmatpush.bf16.msra.mxu2 %v470_v21  ;;  %334 = vmatpush.bf16.msra.mxu3 %v474_v22  ;;  %v450_v40 = vor.u32 %v498_v37, %v447_v38  ;;  %v496_v43 = vld [vmem:[#allocation10 + $0x24] sm:$0xf]  ;;  %v439_v44 = vld [vmem:[#allocation10 + $0x28] sm:$0xf0]  ;;  %v438_v45 = vor.u32 %v497_v42, %v437_v41  ;;  %v429_v53 = vld [vmem:[#allocation10 + $0x10] sm:$0xf] }
  0x22   :  { %v442_v46 = vor.u32 %v496_v43, %v439_v44  ;;  %v518_v47 = vld [vmem:[%s750_s2] ss:$0 sm:$0xff]  ;;  %v495_v54 = vld [vmem:[#allocation10 + $0x14] sm:$0xf0]  ;;  %v494_v55 = vld [vmem:[#allocation10 + $0x14] sm:$0xf] }
  0x23   :  { %v430_v56 = vor.u32 %v495_v54, %v429_v53  ;;  %v431_v57 = vld [vmem:[#allocation10 + $0x18] sm:$0xf0]  ;;  %v421_v59 = vld [vmem:[#allocation10] sm:$0xf]  ;;  %v493_v60 = vld [vmem:[#allocation10 + $0x4] sm:$0xf0] }
  0x24   :  { %206 = vmatpush.bf16.msra.mxu1 %v488_v6  ;;  %v434_v58 = vor.u32 %v494_v55, %v431_v57  ;;  %v492_v61 = vld [vmem:[#allocation10 + $0x4] sm:$0xf]  ;;  %v422_v62 = vor.u32 %v493_v60, %v421_v59  ;;  %v423_v63 = vld [vmem:[#allocation10 + $0x8] sm:$0xf0]  ;;  %v519_v1 = vld [vmem:[#allocation8] ss:$0 sm:$0xff] }
  0x25   :  { %322 = vmatpush.bf16.msra.mxu2 %v462_v27  ;;  %335 = vmatpush.bf16.msra.mxu3 %v466_v28  ;;  %v426_v0 = vor.u32 %v492_v61, %v423_v63 }
  0x28   :  { %207 = vmatpush.bf16.msra.mxu1 %v487_v7  ;;  %v234_v7 = vld [vmem:[%s754_s6] sm:$0x3] }
  0x29   :  { %323 = vmatpush.bf16.msra.mxu2 %v454_v33  ;;  %336 = vmatpush.bf16.msra.mxu3 %v458_v34 }
  0x2c   :  { %208 = vmatpush.bf16.msra.mxu1 %v486_v8  ;;  %v236_v8 = vperm.slane %v234_v7, 0 }
  0x2d   :  { %324 = vmatpush.bf16.msra.mxu2 %v446_v39  ;;  %337 = vmatpush.bf16.msra.mxu3 %v450_v40 }
  0x30   :  { %209 = vmatpush.bf16.msra.mxu1 %v485_v9  ;;  %v237_v9 = vperm.slane %v234_v7, 1 }
  0x31   :  { %325 = vmatpush.bf16.msra.mxu2 %v438_v45  ;;  %338 = vmatpush.bf16.msra.mxu3 %v442_v46 }
  0x34   :  { %210 = vmatpush.bf16.msra.mxu1 %v484_v10 }
  0x35   :  { %326 = vmatpush.bf16.msra.mxu2 %v430_v56  ;;  %339 = vmatpush.bf16.msra.mxu3 %v434_v58 }
  0x39   :  { %327 = vmatpush.bf16.msra.mxu2 %v422_v62  ;;  %340 = vmatpush.bf16.msra.mxu3 %v426_v0 }
  0x97   :  { %v129_v48 = vpop.f32.mrf.mxu0 }
  0x98   :  { %v130_v49 = vadd.f32 %v518_v47, %v129_v48 }
  0x9a   :  { %v133_v50 = vmax.f32 %v130_v49, 0.0 }
  0x9c   :  { %v134_v51 = vpack.c.bf16 %v133_v50, %v133_v50 }
  0x9e   :  { %211 = vmatmul.bf16.vlgmr.msra.gmra.mxu1 %v134_v51 }
  0x9f   :  { %v131_v52 = vpop.f32.mrf.mxu0 }
 0x11b   :  { %v212_v2 = vpop.f32.mrf.mxu1 }
 0x11c   :  { %v213_v3 = vadd.f32 %v519_v1, %v212_v2 }
 0x11e   :  { %v216_v4 = vmax.f32 %v213_v3, 0.0 }
 0x120   :  { %v217_v5 = vpack.c.bf16 %v216_v4, %v216_v4 }
 0x122   :  { %328 = vmatmul.bf16.vlgmr.msra.gmra.mxu2 %v217_v5  ;;  %341 = vmatmul.bf16.vlgmr.msra.gmra.mxu3 %v217_v5 }
 0x123   :  { %v214_v6 = vpop.f32.mrf.mxu1 }
 0x1a5   :  { %v329_v10 = vpop.f32.mrf.mxu2  ;;  %v342_v11 = vpop.f32.mrf.mxu3 }
 0x1a6   :  { %v330_v12 = vadd.f32 %v329_v10, %v236_v8  ;;  %v343_v13 = vadd.f32 %v342_v11, %v237_v9 }
 0x1a8   :  { %361 = vst [vmem:[#allocation11] sm:$0xff] %v330_v12  ;;  %v350_v14 = vmax.f32 %v343_v13, -20.0 }
 0x1aa   :  { %v352_v15 = vmin.f32 %v350_v14, 2.0 }
 0x1ac   :  { %v355_v16 = vmul.f32 1.442695, %v352_v15 }
 0x1ad   :  { %v331_v17 = vpop.f32.mrf.mxu2  ;;  %v344_v18 = vpop.f32.mrf.mxu3 }
 0x1ae   :  { %520 = vpow2.f32 %v355_v16 }
 0x1b4   :  { %v521_v19 = vpop.eup %520 }
 0x1b5   :  { %362 = vst [vmem:[#allocation11 + $0x8] sm:$0xff] %v521_v19 }
 0x1b6   :  { %373 = dma.vmem_to_hbm [thread:$0]  %s369_s29, 256, %s371_s9, [#allocation4]  }
 0x1b7   :  { %672 = dma.done.wait [#allocation4], 256  }
 0x1b8   :  { %673 = vsyncadd [#allocation4], 4294967040 }
 0x1b9   :  { %378 = vsyncpa [#allocation3], 1 }
 0x1ba   :  { %379 = vsyncpa [#allocation6], 1 }
 0x1bb   :  { %380 = vsyncpa [#allocation9], 1 }
 0x1bc   :  { %381 = vsyncpa [#allocation4], 1 }

</bundles_post_ra>
